<compile_context>
chip_gen: v7x
topology: tpu7x:2x2x1
jax: 0.10.0
libtpu: 0.0.40
codegen_flags: <defaults>
</compile_context>

<pallas_src>
import functools

import jax
import jax.numpy as jnp
from jax.experimental import pallas as pl
from jax.experimental.pallas import tpu as pltpu


def _round_up(a, b):
    return ((a + b - 1) // b) * b


def _club_kernel(x_ref, y_ref, w1_ref, b1_ref, w2_ref, b2_ref, out_ref,
                 sy_ref, sy2_ref, s1_ref, s2_ref, s3_ref, s4_ref,
                 *, n_actual, tile_n, y_dim, masked):
    i = pl.program_id(0)
    inv_n = 1.0 / n_actual

    # --- step 0: zero all streaming accumulators ---
    @pl.when(i == 0)
    def _init():
        sy_ref[...] = jnp.zeros_like(sy_ref)
        sy2_ref[...] = jnp.zeros_like(sy2_ref)
        s1_ref[...] = jnp.zeros_like(s1_ref)
        s2_ref[...] = jnp.zeros_like(s2_ref)
        s3_ref[...] = jnp.zeros_like(s3_ref)
        s4_ref[...] = jnp.zeros_like(s4_ref)

    # --- q(y|x) MLP on this tile: fused first layer + block-diag second layer ---
    x = x_ref[...]                                                # [tile_n, x_dim]
    y = y_ref[...]                                                # [tile_n, y_dim] (zero-padded rows)
    h = jnp.maximum(
        jnp.dot(x, w1_ref[...], preferred_element_type=jnp.float32) + b1_ref[...],
        0.0)                                                      # [tile_n, 2*h2]
    o = jnp.dot(h, w2_ref[...], preferred_element_type=jnp.float32) + b2_ref[...]
    mu = o[:, :y_dim]                                             # [tile_n, y_dim]
    logvar = jnp.tanh(o[:, y_dim:])                               # [tile_n, y_dim]

    # half_inv = 0.5 / exp(logvar); zero it on padded rows so they drop out of
    # every mu/logvar-dependent accumulator (y rows are already zero-padded).
    half_inv = 0.5 * jnp.exp(-logvar)
    if masked:
        rows = jax.lax.broadcasted_iota(jnp.int32, half_inv.shape, 0) + i * tile_n
        half_inv = jnp.where(rows < n_actual, half_inv, 0.0)

    mu_hi = mu * half_inv

    # Streaming accumulators (per y_dim component).  With
    #   positive - negative = [E[y^2] - y_i^2 + 2*mu_i*(y_i - E[y])] * half_inv_i
    # the sum over samples factorizes into these six vectors.
    sy_ref[...] += jnp.sum(y, axis=0, keepdims=True)
    sy2_ref[...] += jnp.sum(y * y, axis=0, keepdims=True)
    s1_ref[...] += jnp.sum(half_inv, axis=0, keepdims=True)
    s2_ref[...] += jnp.sum(y * y * half_inv, axis=0, keepdims=True)
    s3_ref[...] += jnp.sum(y * mu_hi, axis=0, keepdims=True)
    s4_ref[...] += jnp.sum(mu_hi, axis=0, keepdims=True)

    # --- last step: combine accumulators into the scalar MI estimate ---
    @pl.when(i == pl.num_programs(0) - 1)
    def _finalize():
        ey = sy_ref[...] * inv_n                                  # E[y]      [1, y_dim]
        ey2 = sy2_ref[...] * inv_n                                # E[y^2]    [1, y_dim]
        per_dim = (ey2 * s1_ref[...] - s2_ref[...]
                   + 2.0 * s3_ref[...] - 2.0 * ey * s4_ref[...])  # [1, y_dim]
        out_ref[...] = jnp.sum(per_dim, keepdims=True) * inv_n    # mean over samples


def club_forward(x, y, params, *, tile_n=256):
    """Pallas CLUB forward. x: [N, x_dim] f32, y: [N, y_dim] f32 -> scalar mi_est."""
    (w1m, b1m, w2m, b2m, w1v, b1v, w2v, b2v) = params
    n, x_dim = x.shape
    _, y_dim = y.shape
    h2 = w1m.shape[1]

    # Host-side weight packing (layout plumbing, done once per call):
    #   first layer:  [x_dim, 2*h2]   = [w1_mu | w1_logvar]
    #   second layer: [2*h2, 2*y_dim] = block-diag(w2_mu, w2_logvar)
    w1 = jnp.concatenate([w1m, w1v], axis=1)
    b1 = jnp.concatenate([b1m, b1v], axis=1)
    z = jnp.zeros((h2, y_dim), w2m.dtype)
    w2 = jnp.concatenate(
        [jnp.concatenate([w2m, z], axis=1),
         jnp.concatenate([z, w2v], axis=1)], axis=0)
    b2 = jnp.concatenate([b2m, b2v], axis=1)

    # Tiling of the sample axis (tile rows are a multiple of 8 for (8,128) layout).
    tile_n = max(8, _round_up(min(tile_n, _round_up(n, 8)), 8))
    n_pad = _round_up(n, tile_n)
    if n_pad != n:
        x = jnp.pad(x, ((0, n_pad - n), (0, 0)))
        y = jnp.pad(y, ((0, n_pad - n), (0, 0)))   # zero rows keep sum(y), sum(y^2) exact
    num_tiles = n_pad // tile_n

    kernel = functools.partial(
        _club_kernel, n_actual=n, tile_n=tile_n, y_dim=y_dim, masked=(n_pad != n))

    out = pl.pallas_call(
        kernel,
        out_shape=jax.ShapeDtypeStruct((1, 1), jnp.float32),
        grid=(num_tiles,),
        in_specs=[
            pl.BlockSpec((tile_n, x_dim), lambda i: (i, 0)),   # x: streamed per tile
            pl.BlockSpec((tile_n, y_dim), lambda i: (i, 0)),   # y: streamed per tile
            pl.BlockSpec(w1.shape, lambda i: (0, 0)),          # weights/biases resident
            pl.BlockSpec(b1.shape, lambda i: (0, 0)),
            pl.BlockSpec(w2.shape, lambda i: (0, 0)),
            pl.BlockSpec(b2.shape, lambda i: (0, 0)),
        ],
        out_specs=pl.BlockSpec((1, 1), lambda i: (0, 0)),
        scratch_shapes=[
            pltpu.VMEM((1, y_dim), jnp.float32),   # sum(y)
            pltpu.VMEM((1, y_dim), jnp.float32),   # sum(y^2)
            pltpu.VMEM((1, y_dim), jnp.float32),   # sum(half_inv)
            pltpu.VMEM((1, y_dim), jnp.float32),   # sum(y^2 * half_inv)
            pltpu.VMEM((1, y_dim), jnp.float32),   # sum(mu * y * half_inv)
            pltpu.VMEM((1, y_dim), jnp.float32),   # sum(mu * half_inv)
        ],
        compiler_params=pltpu.CompilerParams(
            dimension_semantics=("arbitrary",),    # accumulation axis -> sequential
        ),
    )(x, y, w1, b1, w2, b2)
    return out[0, 0]


def club_forward_ref(x, y, params):
    """Pure-JAX reference mirroring the PyTorch forward exactly."""
    (w1m, b1m, w2m, b2m, w1v, b1v, w2v, b2v) = params
    mu = jnp.maximum(x @ w1m + b1m, 0.0) @ w2m + b2m
    logvar = jnp.tanh(jnp.maximum(x @ w1v + b1v, 0.0) @ w2v + b2v)
    positive = -((mu - y) ** 2) / 2.0 / jnp.exp(logvar)
    negative = -jnp.mean((y[None, :, :] - mu[:, None, :]) ** 2, axis=1) / 2.0 / jnp.exp(logvar)
    return jnp.mean(positive.sum(-1) - negative.sum(-1))


def init_params(key, x_dim, y_dim, hidden_size):
    h2 = hidden_size // 2
    keys = jax.random.split(key, 8)
    scale = 0.1
    w1m = scale * jax.random.normal(keys[0], (x_dim, h2), jnp.float32)
    b1m = scale * jax.random.normal(keys[1], (1, h2), jnp.float32)
    w2m = scale * jax.random.normal(keys[2], (h2, y_dim), jnp.float32)
    b2m = scale * jax.random.normal(keys[3], (1, y_dim), jnp.float32)
    w1v = scale * jax.random.normal(keys[4], (x_dim, h2), jnp.float32)
    b1v = scale * jax.random.normal(keys[5], (1, h2), jnp.float32)
    w2v = scale * jax.random.normal(keys[6], (h2, y_dim), jnp.float32)
    b2v = scale * jax.random.normal(keys[7], (1, y_dim), jnp.float32)
    return (w1m, b1m, w2m, b2m, w1v, b1v, w2v, b2v)


# TODO(synk): optimizer_step / loglikeli / learning_loss are training utilities
# (Adam + autograd) outside the forward pass and are not translated to Pallas.

if __name__ == "__main__":
    N, X_DIM, Y_DIM, HIDDEN = 20, 32, 16, 32

    key = jax.random.PRNGKey(0)
    kx, ky, kp = jax.random.split(key, 3)
    x = jax.random.normal(kx, (N, X_DIM), jnp.float32)
    y = jax.random.normal(ky, (N, Y_DIM), jnp.float32)
    params = init_params(kp, X_DIM, Y_DIM, HIDDEN)

    mi_ref = jax.block_until_ready(club_forward_ref(x, y, params))

    # Multi-tile path with padding/masking (N=20, tile_n=8 -> 3 tiles).
    mi_est = jax.block_until_ready(club_forward(x, y, params, tile_n=8))
    assert jnp.allclose(mi_est, mi_ref, rtol=2e-3, atol=2e-4), (mi_est, mi_ref)

    # Single-tile path (default tile size covers all samples).
    mi_est2 = jax.block_until_ready(club_forward(x, y, params))
    assert jnp.allclose(mi_est2, mi_ref, rtol=2e-3, atol=2e-4), (mi_est2, mi_ref)

    print("KERNEL_OK")
</pallas_src>

<mosaic_0001>
module attributes {stable_mosaic.version = 11 : i64} {
  func.func @_club_kernel(%arg0: i32, %arg1: memref<8x32xf32, #tpu.memory_space<vmem>>, %arg2: memref<8x16xf32, #tpu.memory_space<vmem>>, %arg3: memref<32x32xf32, #tpu.memory_space<vmem>>, %arg4: memref<1x32xf32, #tpu.memory_space<vmem>>, %arg5: memref<32x32xf32, #tpu.memory_space<vmem>>, %arg6: memref<1x32xf32, #tpu.memory_space<vmem>>, %arg7: memref<1x1xf32, #tpu.memory_space<vmem>>, %arg8: memref<1x16xf32, #tpu.memory_space<vmem>>, %arg9: memref<1x16xf32, #tpu.memory_space<vmem>>, %arg10: memref<1x16xf32, #tpu.memory_space<vmem>>, %arg11: memref<1x16xf32, #tpu.memory_space<vmem>>, %arg12: memref<1x16xf32, #tpu.memory_space<vmem>>, %arg13: memref<1x16xf32, #tpu.memory_space<vmem>>) attributes {dimension_semantics = [#tpu.dimension_semantics<arbitrary>], iteration_bounds = array<i64: 3>, scalar_prefetch = 0 : i64, scratch_operands = 6 : i64, tpu.core_type = #tpu.core_type<tc>, window_params = [{transform_indices = @transform_0, window_bounds = array<i64: 8, 32>}, {transform_indices = @transform_1, window_bounds = array<i64: 8, 16>}, {pipeline_mode = #tpu.pipeline_mode<synchronous>, transform_indices = @transform_2, window_bounds = array<i64: 32, 32>}, {pipeline_mode = #tpu.pipeline_mode<synchronous>, transform_indices = @transform_3, window_bounds = array<i64: 1, 32>}, {pipeline_mode = #tpu.pipeline_mode<synchronous>, transform_indices = @transform_4, window_bounds = array<i64: 32, 32>}, {pipeline_mode = #tpu.pipeline_mode<synchronous>, transform_indices = @transform_5, window_bounds = array<i64: 1, 32>}, {pipeline_mode = #tpu.pipeline_mode<synchronous>, transform_indices = @transform_6, window_bounds = array<i64: 1, 1>}]} {
    %c0_i32 = arith.constant 0 : i32
    %0 = arith.cmpi eq, %arg0, %c0_i32 : i32
    %1 = arith.extui %0 : i1 to i32
    %c0_i32_0 = arith.constant 0 : i32
    %2 = arith.cmpi ne, %1, %c0_i32_0 : i32
    scf.if %2 {
      %cst_48 = arith.constant 0.000000e+00 : f32
      %71 = vector.broadcast %cst_48 : f32 to vector<1x16xf32>
      %c0_49 = arith.constant 0 : index
      %c0_50 = arith.constant 0 : index
      %72 = vector.load %arg8[%c0_49, %c0_50] : memref<1x16xf32, #tpu.memory_space<vmem>>, vector<1x16xf32>
      tpu.vector_store %arg8[%c0_49, %c0_50], %71 {strides = array<i32>} : memref<1x16xf32, #tpu.memory_space<vmem>>, vector<1x16xf32>,
      %cst_51 = arith.constant 0.000000e+00 : f32
      %73 = vector.broadcast %cst_51 : f32 to vector<1x16xf32>
      %c0_52 = arith.constant 0 : index
      %c0_53 = arith.constant 0 : index
      %74 = vector.load %arg9[%c0_52, %c0_53] : memref<1x16xf32, #tpu.memory_space<vmem>>, vector<1x16xf32>
      tpu.vector_store %arg9[%c0_52, %c0_53], %73 {strides = array<i32>} : memref<1x16xf32, #tpu.memory_space<vmem>>, vector<1x16xf32>,
      %cst_54 = arith.constant 0.000000e+00 : f32
      %75 = vector.broadcast %cst_54 : f32 to vector<1x16xf32>
      %c0_55 = arith.constant 0 : index
      %c0_56 = arith.constant 0 : index
      %76 = vector.load %arg10[%c0_55, %c0_56] : memref<1x16xf32, #tpu.memory_space<vmem>>, vector<1x16xf32>
      tpu.vector_store %arg10[%c0_55, %c0_56], %75 {strides = array<i32>} : memref<1x16xf32, #tpu.memory_space<vmem>>, vector<1x16xf32>,
      %cst_57 = arith.constant 0.000000e+00 : f32
      %77 = vector.broadcast %cst_57 : f32 to vector<1x16xf32>
      %c0_58 = arith.constant 0 : index
      %c0_59 = arith.constant 0 : index
      %78 = vector.load %arg11[%c0_58, %c0_59] : memref<1x16xf32, #tpu.memory_space<vmem>>, vector<1x16xf32>
      tpu.vector_store %arg11[%c0_58, %c0_59], %77 {strides = array<i32>} : memref<1x16xf32, #tpu.memory_space<vmem>>, vector<1x16xf32>,
      %cst_60 = arith.constant 0.000000e+00 : f32
      %79 = vector.broadcast %cst_60 : f32 to vector<1x16xf32>
      %c0_61 = arith.constant 0 : index
      %c0_62 = arith.constant 0 : index
      %80 = vector.load %arg12[%c0_61, %c0_62] : memref<1x16xf32, #tpu.memory_space<vmem>>, vector<1x16xf32>
      tpu.vector_store %arg12[%c0_61, %c0_62], %79 {strides = array<i32>} : memref<1x16xf32, #tpu.memory_space<vmem>>, vector<1x16xf32>,
      %cst_63 = arith.constant 0.000000e+00 : f32
      %81 = vector.broadcast %cst_63 : f32 to vector<1x16xf32>
      %c0_64 = arith.constant 0 : index
      %c0_65 = arith.constant 0 : index
      %82 = vector.load %arg13[%c0_64, %c0_65] : memref<1x16xf32, #tpu.memory_space<vmem>>, vector<1x16xf32>
      tpu.vector_store %arg13[%c0_64, %c0_65], %81 {strides = array<i32>} : memref<1x16xf32, #tpu.memory_space<vmem>>, vector<1x16xf32>,
    } else {
    }
    %c0 = arith.constant 0 : index
    %c0_1 = arith.constant 0 : index
    %3 = vector.load %arg1[%c0, %c0_1] : memref<8x32xf32, #tpu.memory_space<vmem>>, vector<8x32xf32>
    %c0_2 = arith.constant 0 : index
    %c0_3 = arith.constant 0 : index
    %4 = vector.load %arg2[%c0_2, %c0_3] : memref<8x16xf32, #tpu.memory_space<vmem>>, vector<8x16xf32>
    %c0_4 = arith.constant 0 : index
    %c0_5 = arith.constant 0 : index
    %5 = vector.load %arg3[%c0_4, %c0_5] : memref<32x32xf32, #tpu.memory_space<vmem>>, vector<32x32xf32>
    %cst = arith.constant dense<0.000000e+00> : vector<8x32xf32>
    %6 = tpu.matmul %3, %5, %cst {dimension_numbers = #tpu.dot_dimension_numbers<[1], [0], [0], [1], [0, 0, 1, 1], [], []>} : vector<8x32xf32>, vector<32x32xf32>, vector<8x32xf32> -> vector<8x32xf32>
    %c0_6 = arith.constant 0 : index
    %c0_7 = arith.constant 0 : index
    %7 = vector.load %arg4[%c0_6, %c0_7] : memref<1x32xf32, #tpu.memory_space<vmem>>, vector<1x32xf32>
    %8 = vector.broadcast %7 : vector<1x32xf32> to vector<8x32xf32>
    %9 = arith.addf %6, %8 : vector<8x32xf32>
    %cst_8 = arith.constant 0.000000e+00 : f32
    %10 = vector.broadcast %cst_8 : f32 to vector<8x32xf32>
    %11 = arith.maximumf %9, %10 : vector<8x32xf32>
    %c0_9 = arith.constant 0 : index
    %c0_10 = arith.constant 0 : index
    %12 = vector.load %arg5[%c0_9, %c0_10] : memref<32x32xf32, #tpu.memory_space<vmem>>, vector<32x32xf32>
    %cst_11 = arith.constant dense<0.000000e+00> : vector<8x32xf32>
    %13 = tpu.matmul %11, %12, %cst_11 {dimension_numbers = #tpu.dot_dimension_numbers<[1], [0], [0], [1], [0, 0, 1, 1], [], []>} : vector<8x32xf32>, vector<32x32xf32>, vector<8x32xf32> -> vector<8x32xf32>
    %c0_12 = arith.constant 0 : index
    %c0_13 = arith.constant 0 : index
    %14 = vector.load %arg6[%c0_12, %c0_13] : memref<1x32xf32, #tpu.memory_space<vmem>>, vector<1x32xf32>
    %15 = vector.broadcast %14 : vector<1x32xf32> to vector<8x32xf32>
    %16 = arith.addf %13, %15 : vector<8x32xf32>
    %17 = vector.extract_strided_slice %16 {offsets = [0, 0], sizes = [8, 16], strides = [1, 1]} : vector<8x32xf32> to vector<8x16xf32>
    %18 = vector.extract_strided_slice %16 {offsets = [0, 16], sizes = [8, 16], strides = [1, 1]} : vector<8x32xf32> to vector<8x16xf32>
    %19 = math.tanh %18 : vector<8x16xf32>
    %cst_14 = arith.constant 0.000000e+00 : f32
    %20 = vector.broadcast %cst_14 : f32 to vector<8x16xf32>
    %21 = arith.subf %20, %19 : vector<8x16xf32>
    %22 = math.exp %21 : vector<8x16xf32>
    %cst_15 = arith.constant 5.000000e-01 : f32
    %23 = vector.broadcast %cst_15 : f32 to vector<8x16xf32>
    %24 = arith.mulf %23, %22 : vector<8x16xf32>
    %25 = tpu.iota {dimensions = array<i32: 0>} : vector<8x16xi32>
    %c8_i32 = arith.constant 8 : i32
    %26 = arith.muli %arg0, %c8_i32 : i32
    %27 = vector.broadcast %26 : i32 to vector<8x16xi32>
    %28 = arith.addi %25, %27 : vector<8x16xi32>
    %c20_i32 = arith.constant 20 : i32
    %29 = vector.broadcast %c20_i32 : i32 to vector<8x16xi32>
    %30 = arith.cmpi slt, %28, %29 : vector<8x16xi32>
    %cst_16 = arith.constant 0.000000e+00 : f32
    %31 = vector.broadcast %cst_16 : f32 to vector<8x16xf32>
    %32 = arith.select %30, %24, %31 : vector<8x16xi1>, vector<8x16xf32>
    %33 = arith.mulf %17, %32 : vector<8x16xf32>
    %c0_17 = arith.constant 0 : index
    %c0_18 = arith.constant 0 : index
    %34 = vector.load %arg8[%c0_17, %c0_18] : memref<1x16xf32, #tpu.memory_space<vmem>>, vector<1x16xf32>
    %cst_19 = arith.constant dense<0.000000e+00> : vector<16xf32>
    %35 = vector.multi_reduction <add>, %4, %cst_19 [0] : vector<8x16xf32> to vector<16xf32>
    %36 = vector.shape_cast %35 : vector<16xf32> to vector<1x16xf32>
    %37 = arith.addf %34, %36 : vector<1x16xf32>
    %c0_20 = arith.constant 0 : index
    %c0_21 = arith.constant 0 : index
    %38 = vector.load %arg8[%c0_20, %c0_21] : memref<1x16xf32, #tpu.memory_space<vmem>>, vector<1x16xf32>
    tpu.vector_store %arg8[%c0_20, %c0_21], %37 {strides = array<i32>} : memref<1x16xf32, #tpu.memory_space<vmem>>, vector<1x16xf32>,
    %c0_22 = arith.constant 0 : index
    %c0_23 = arith.constant 0 : index
    %39 = vector.load %arg9[%c0_22, %c0_23] : memref<1x16xf32, #tpu.memory_space<vmem>>, vector<1x16xf32>
    %40 = arith.mulf %4, %4 : vector<8x16xf32>
    %cst_24 = arith.constant dense<0.000000e+00> : vector<16xf32>
    %41 = vector.multi_reduction <add>, %40, %cst_24 [0] : vector<8x16xf32> to vector<16xf32>
    %42 = vector.shape_cast %41 : vector<16xf32> to vector<1x16xf32>
    %43 = arith.addf %39, %42 : vector<1x16xf32>
    %c0_25 = arith.constant 0 : index
    %c0_26 = arith.constant 0 : index
    %44 = vector.load %arg9[%c0_25, %c0_26] : memref<1x16xf32, #tpu.memory_space<vmem>>, vector<1x16xf32>
    tpu.vector_store %arg9[%c0_25, %c0_26], %43 {strides = array<i32>} : memref<1x16xf32, #tpu.memory_space<vmem>>, vector<1x16xf32>,
    %c0_27 = arith.constant 0 : index
    %c0_28 = arith.constant 0 : index
    %45 = vector.load %arg10[%c0_27, %c0_28] : memref<1x16xf32, #tpu.memory_space<vmem>>, vector<1x16xf32>
    %cst_29 = arith.constant dense<0.000000e+00> : vector<16xf32>
    %46 = vector.multi_reduction <add>, %32, %cst_29 [0] : vector<8x16xf32> to vector<16xf32>
    %47 = vector.shape_cast %46 : vector<16xf32> to vector<1x16xf32>
    %48 = arith.addf %45, %47 : vector<1x16xf32>
    %c0_30 = arith.constant 0 : index
    %c0_31 = arith.constant 0 : index
    %49 = vector.load %arg10[%c0_30, %c0_31] : memref<1x16xf32, #tpu.memory_space<vmem>>, vector<1x16xf32>
    tpu.vector_store %arg10[%c0_30, %c0_31], %48 {strides = array<i32>} : memref<1x16xf32, #tpu.memory_space<vmem>>, vector<1x16xf32>,
    %c0_32 = arith.constant 0 : index
    %c0_33 = arith.constant 0 : index
    %50 = vector.load %arg11[%c0_32, %c0_33] : memref<1x16xf32, #tpu.memory_space<vmem>>, vector<1x16xf32>
    %51 = arith.mulf %4, %4 : vector<8x16xf32>
    %52 = arith.mulf %51, %32 : vector<8x16xf32>
    %cst_34 = arith.constant dense<0.000000e+00> : vector<16xf32>
    %53 = vector.multi_reduction <add>, %52, %cst_34 [0] : vector<8x16xf32> to vector<16xf32>
    %54 = vector.shape_cast %53 : vector<16xf32> to vector<1x16xf32>
    %55 = arith.addf %50, %54 : vector<1x16xf32>
    %c0_35 = arith.constant 0 : index
    %c0_36 = arith.constant 0 : index
    %56 = vector.load %arg11[%c0_35, %c0_36] : memref<1x16xf32, #tpu.memory_space<vmem>>, vector<1x16xf32>
    tpu.vector_store %arg11[%c0_35, %c0_36], %55 {strides = array<i32>} : memref<1x16xf32, #tpu.memory_space<vmem>>, vector<1x16xf32>,
    %c0_37 = arith.constant 0 : index
    %c0_38 = arith.constant 0 : index
    %57 = vector.load %arg12[%c0_37, %c0_38] : memref<1x16xf32, #tpu.memory_space<vmem>>, vector<1x16xf32>
    %58 = arith.mulf %4, %33 : vector<8x16xf32>
    %cst_39 = arith.constant dense<0.000000e+00> : vector<16xf32>
    %59 = vector.multi_reduction <add>, %58, %cst_39 [0] : vector<8x16xf32> to vector<16xf32>
    %60 = vector.shape_cast %59 : vector<16xf32> to vector<1x16xf32>
    %61 = arith.addf %57, %60 : vector<1x16xf32>
    %c0_40 = arith.constant 0 : index
    %c0_41 = arith.constant 0 : index
    %62 = vector.load %arg12[%c0_40, %c0_41] : memref<1x16xf32, #tpu.memory_space<vmem>>, vector<1x16xf32>
    tpu.vector_store %arg12[%c0_40, %c0_41], %61 {strides = array<i32>} : memref<1x16xf32, #tpu.memory_space<vmem>>, vector<1x16xf32>,
    %c0_42 = arith.constant 0 : index
    %c0_43 = arith.constant 0 : index
    %63 = vector.load %arg13[%c0_42, %c0_43] : memref<1x16xf32, #tpu.memory_space<vmem>>, vector<1x16xf32>
    %cst_44 = arith.constant dense<0.000000e+00> : vector<16xf32>
    %64 = vector.multi_reduction <add>, %33, %cst_44 [0] : vector<8x16xf32> to vector<16xf32>
    %65 = vector.shape_cast %64 : vector<16xf32> to vector<1x16xf32>
    %66 = arith.addf %63, %65 : vector<1x16xf32>
    %c0_45 = arith.constant 0 : index
    %c0_46 = arith.constant 0 : index
    %67 = vector.load %arg13[%c0_45, %c0_46] : memref<1x16xf32, #tpu.memory_space<vmem>>, vector<1x16xf32>
    tpu.vector_store %arg13[%c0_45, %c0_46], %66 {strides = array<i32>} : memref<1x16xf32, #tpu.memory_space<vmem>>, vector<1x16xf32>,
    %c2_i32 = arith.constant 2 : i32
    %68 = arith.cmpi eq, %arg0, %c2_i32 : i32
    %69 = arith.extui %68 : i1 to i32
    %c0_i32_47 = arith.constant 0 : i32
    %70 = arith.cmpi ne, %69, %c0_i32_47 : i32
    scf.if %70 {
      %c0_48 = arith.constant 0 : index
      %c0_49 = arith.constant 0 : index
      %71 = vector.load %arg8[%c0_48, %c0_49] : memref<1x16xf32, #tpu.memory_space<vmem>>, vector<1x16xf32>
      %cst_50 = arith.constant 5.000000e-02 : f32
      %72 = vector.broadcast %cst_50 : f32 to vector<1x16xf32>
      %73 = arith.mulf %71, %72 : vector<1x16xf32>
      %c0_51 = arith.constant 0 : index
      %c0_52 = arith.constant 0 : index
      %74 = vector.load %arg9[%c0_51, %c0_52] : memref<1x16xf32, #tpu.memory_space<vmem>>, vector<1x16xf32>
      %cst_53 = arith.constant 5.000000e-02 : f32
      %75 = vector.broadcast %cst_53 : f32 to vector<1x16xf32>
      %76 = arith.mulf %74, %75 : vector<1x16xf32>
      %c0_54 = arith.constant 0 : index
      %c0_55 = arith.constant 0 : index
      %77 = vector.load %arg10[%c0_54, %c0_55] : memref<1x16xf32, #tpu.memory_space<vmem>>, vector<1x16xf32>
      %78 = arith.mulf %76, %77 : vector<1x16xf32>
      %c0_56 = arith.constant 0 : index
      %c0_57 = arith.constant 0 : index
      %79 = vector.load %arg11[%c0_56, %c0_57] : memref<1x16xf32, #tpu.memory_space<vmem>>, vector<1x16xf32>
      %80 = arith.subf %78, %79 : vector<1x16xf32>
      %c0_58 = arith.constant 0 : index
      %c0_59 = arith.constant 0 : index
      %81 = vector.load %arg12[%c0_58, %c0_59] : memref<1x16xf32, #tpu.memory_space<vmem>>, vector<1x16xf32>
      %cst_60 = arith.constant 2.000000e+00 : f32
      %82 = vector.broadcast %cst_60 : f32 to vector<1x16xf32>
      %83 = arith.mulf %82, %81 : vector<1x16xf32>
      %84 = arith.addf %80, %83 : vector<1x16xf32>
      %cst_61 = arith.constant 2.000000e+00 : f32
      %85 = vector.broadcast %cst_61 : f32 to vector<1x16xf32>
      %86 = arith.mulf %85, %73 : vector<1x16xf32>
      %c0_62 = arith.constant 0 : index
      %c0_63 = arith.constant 0 : index
      %87 = vector.load %arg13[%c0_62, %c0_63] : memref<1x16xf32, #tpu.memory_space<vmem>>, vector<1x16xf32>
      %88 = arith.mulf %86, %87 : vector<1x16xf32>
      %89 = arith.subf %84, %88 : vector<1x16xf32>
      %90 = vector.shape_cast %89 : vector<1x16xf32> to vector<1x1x16xf32>
      %cst_64 = arith.constant dense<0.000000e+00> : vector<1xf32>
      %91 = vector.multi_reduction <add>, %90, %cst_64 [1, 2] : vector<1x1x16xf32> to vector<1xf32>
      %92 = vector.shape_cast %91 : vector<1xf32> to vector<1x1x1xf32>
      %93 = vector.extract %92[0, 0, 0] : f32 from vector<1x1x1xf32>
      %94 = vector.broadcast %93 : f32 to vector<1x1xf32>
      %cst_65 = arith.constant 5.000000e-02 : f32
      %95 = vector.broadcast %cst_65 : f32 to vector<1x1xf32>
      %96 = arith.mulf %94, %95 : vector<1x1xf32>
      %c0_66 = arith.constant 0 : index
      %c0_67 = arith.constant 0 : index
      %97 = vector.load %arg7[%c0_66, %c0_67] : memref<1x1xf32, #tpu.memory_space<vmem>>, vector<1x1xf32>
      tpu.vector_store %arg7[%c0_66, %c0_67], %96 {strides = array<i32>} : memref<1x1xf32, #tpu.memory_space<vmem>>, vector<1x1xf32>,
    } else {
    }
    return
  }
  func.func @transform_0(%arg0: i32) -> (i32, i32) {
    %c0_i32 = arith.constant 0 : i32
    %c0_i32_0 = arith.constant 0 : i32
    return %arg0, %c0_i32 : i32, i32
  }
  func.func @transform_1(%arg0: i32) -> (i32, i32) {
    %c0_i32 = arith.constant 0 : i32
    %c0_i32_0 = arith.constant 0 : i32
    return %arg0, %c0_i32 : i32, i32
  }
  func.func @transform_2(%arg0: i32) -> (i32, i32) {
    %c0_i32 = arith.constant 0 : i32
    %c0_i32_0 = arith.constant 0 : i32
    %c0_i32_1 = arith.constant 0 : i32
    return %c0_i32, %c0_i32_0 : i32, i32
  }
  func.func @transform_3(%arg0: i32) -> (i32, i32) {
    %c0_i32 = arith.constant 0 : i32
    %c0_i32_0 = arith.constant 0 : i32
    %c0_i32_1 = arith.constant 0 : i32
    return %c0_i32, %c0_i32_0 : i32, i32
  }
  func.func @transform_4(%arg0: i32) -> (i32, i32) {
    %c0_i32 = arith.constant 0 : i32
    %c0_i32_0 = arith.constant 0 : i32
    %c0_i32_1 = arith.constant 0 : i32
    return %c0_i32, %c0_i32_0 : i32, i32
  }
  func.func @transform_5(%arg0: i32) -> (i32, i32) {
    %c0_i32 = arith.constant 0 : i32
    %c0_i32_0 = arith.constant 0 : i32
    %c0_i32_1 = arith.constant 0 : i32
    return %c0_i32, %c0_i32_0 : i32, i32
  }
  func.func @transform_6(%arg0: i32) -> (i32, i32) {
    %c0_i32 = arith.constant 0 : i32
    %c0_i32_0 = arith.constant 0 : i32
    %c0_i32_1 = arith.constant 0 : i32
    return %c0_i32, %c0_i32_0 : i32, i32
  }
}

</mosaic_0001>

<bundles_post_ra>
// kernel: tpu_custom_call.1
= control target key start
LH: loop header
LB: loop body
LE: loop exit
PB: predicated region body
PF: predicated region fallthrough
CT: control target
= control target key end

     0   :  { %11 = vsyncpa [#allocation9], 0  ;;  %s1198_s0 = inlined_call_operand.hbm [shape: f32[24,32], index: 0, kind: input, shape index: {}]   ;;  %s1199_s1 = inlined_call_operand.vmem [shape: f32[24,16], index: 1, kind: input, shape index: {}]   ;;  %s1200_s2 = inlined_call_operand.vmem [shape: f32[32,32], index: 2, kind: input, shape index: {}]   ;;  %s1201_s3 = inlined_call_operand.vmem [shape: f32[1,32], index: 3, kind: input, shape index: {}]   ;;  %s1202_s4 = inlined_call_operand.hbm [shape: f32[32,32], index: 4, kind: input, shape index: {}]   ;;  %s1203_s5 = inlined_call_operand.vmem [shape: f32[1,32], index: 5, kind: input, shape index: {}]   ;;  %s1204_s6 = inlined_call_operand.hbm [shape: f32[1,1], index: 6, kind: output, shape index: {}]  }
   0x1   :  { %13 = vsyncpa [#allocation9 + $0x1], 0 }
   0x2   :  { %14 = vsyncpa [#allocation12], 0 }
   0x3   :  { %15 = vsyncpa [#allocation10], 0  ;;  %s993_s21 = smov 0   ;;  %s995_s22 = smov 0  }
   0x4   :  { %s997_s23 = smov 0   ;;  %s999_s24 = smov 0  }
   0x5 LB: > { %s1012_s25 = sadd.s32 4294967295, %s945_s24   ;;  %p41_p0 = scmp.ne.s32.totalorder %s937_s22, %s933_s21  ;;  %s945_s24 = sphi %s999_s24, %s1220_s24   ;;  %s941_s23 = sphi %s997_s23, %s1219_s23   ;;  %s937_s22 = sphi %s995_s22, %s1218_s22   ;;  %s933_s21 = sphi %s993_s21, %s1217_s21  }
   0x6   : > { %p1205_p1 = scmp.eq.s32.totalorder %s1012_s25, 0  ;;  %p684_p2 = scmp.ge.s32.totalorder %s945_s24, 1 }
   0x7   : > { %p183_p3 = scmp.lt.s32.totalorder %s945_s24, 4  ;;  %s947_s28 = smov [#allocation11]  }
   0x8   : > { %p1021_p5 = por %p1205_p1, %p41_p0  ;;  %s201_s29 = sshll.u32 %s947_s28, 4  ;;  %s202_s29 = int_to_ptr.vmem [resolvable:$true] %s201_s29 }
   0x9   : > { %p1025_p6 = pnand %p684_p2, %p183_p3  ;;  %s1038_s7 = sadd.s32 1, %s945_s24  }
   0xa   : > { %s1208_s26 = scalar_select %p1021_p5, 1, 0 }
   0xb   : > { %s1209_s27 = scalar_select %p1025_p6, 1, 0 }
   0xc   : > { %p760_p7 = pneg %p1025_p6  ;;  %s28_s8 = sadd.s32 1, %s941_s23 }
   0xd   : > { %s25_s9 = ssub.s32 %s945_s24, %s1038_s7  ;;  %s819_s12 = scalar_lea.hbm %s1202_s4, 512 }
   0xe   : > { %p1033_p8 = pnand %p760_p7, %p1205_p1  ;;  %p820_p9 = scmp.ne.s32.totalorder %s1202_s4, %s819_s12 }
   0xf   : > { %p826_p13 = scmp.lt.u32.totalorder %s819_s12, %s1202_s4 }
  0x10   : > { %p821_p10 = pneg %p1033_p8 }
  0x12   : > { %p822_p11 = pnand %p821_p10, %p820_p9 }
  0x14   : > { %p823_p12 = pneg %p822_p11 }
  0x16   : > { %p828_p0 = pnand %p826_p13, %p823_p12 }
  0x18   : > { %831 = shalt.err (!%p828_p0)
}
  0x19   : > { %s832_s17 = scalar_lea.vmem %s202_s29, 512  ;;  %p840_p4 = scmp.lt.s32.totalorder %s202_s29, %s202_s29 }
  0x1a   : > { %p833_p2 = scmp.ne.s32.totalorder %s202_s29, %s832_s17  ;;  %p841_p1 = scmp.lt.s32.totalorder %s832_s17, %s832_s17 }
  0x1c   : > { %p835_p3 = pnand %p833_p2, %p821_p10  ;;  %p842_p5 = por %p841_p1, %p840_p4 }
  0x1e   : > { %p836_p7 = pneg %p835_p3 }
  0x20   : > { %p843_p6 = pnand %p842_p5, %p836_p7 }
  0x22   : > { %846 = shalt.err (!%p843_p6)
}
  0x23   : > { %s948_s18 = smov 128   ;;  %s949_s19 = smov 8  }
  0x24   : > { %763 = dma.hbm_to_vmem [thread:$0]  (!%p1033_p8), %s1202_s4, 512, %s202_s29, [#allocation12], %s948_s18, %s948_s18, %s949_s19  }
  0x25   : > { %p26_p9 = scmp.eq.s32.totalorder %s25_s9, 0  ;;  %p35_p10 = scmp.ne.s32.totalorder %s941_s23, %s937_s22 }
  0x26   : > { %p36_p1 = scmp.eq.s32.totalorder %s945_s24, 0  ;;  %p769_p4 = scmp.lt.s32.totalorder %s945_s24, 3 }
  0x27   : > { %s1064_s28 = scalar_select %p26_p9, %s941_s23, %s28_s8  }
  0x28   : > { %p37_p5 = por %p36_p1, %p35_p10  ;;  %s218_s10 = sand.u32 1, %s941_s23  }
  0x29   : > { %s687_s11 = sshll.u32 %s218_s10, 3  ;;  %s688_s12 = sshll.u32 %s945_s24, 7 }
  0x2a   : > { %s1071_s15 = scalar_lea.hbm %s1198_s0, %s688_s12  ;;  %s222_s29 = scalar_lea.vmem [#allocation8], %s687_s11 }
  0x2b   : > { %s229_s30 = sshll.u32 %s222_s29, 4  ;;  %p1075_p6 = pnand %p769_p4, %p37_p5  ;;  %s1073_s30 = int_to_ptr.vmem [resolvable:$true] %s229_s30 }
  0x2c   : > { %s219_s24 = scalar_lea.sflag [#allocation9], %s218_s10  ;;  %s847_s9 = scalar_lea.hbm %s1071_s15, 128 }
  0x2d   : > { %p848_p8 = scmp.ne.s32.totalorder %s1071_s15, %s847_s9  ;;  %p849_p11 = pneg %p1075_p6 }
  0x2e   : > { %s852_s18 = scalar_lea.hbm %s1198_s0, 384  ;;  %p853_p0 = scmp.lt.u32.totalorder %s1071_s15, %s1198_s0 }
  0x2f   : > { %p850_p12 = pnand %p849_p11, %p848_p8  ;;  %p854_p2 = scmp.lt.u32.totalorder %s852_s18, %s847_s9 }
  0x30   : > { %p856_p7 = scmp.lt.u32.totalorder %s847_s9, %s1071_s15 }
  0x31   : > { %p851_p13 = pneg %p850_p12  ;;  %p855_p3 = por %p854_p2, %p853_p0 }
  0x33   : > { %p857_p9 = por %p856_p7, %p855_p3 }
  0x35   : > { %p858_p10 = pnand %p857_p9, %p851_p13 }
  0x37   : > { %861 = shalt.err (!%p858_p10)
}
  0x38   : > { %s862_s21 = scalar_lea.vmem %s1073_s30, 128  ;;  %s950_s10 = smov [#allocation8]  }
  0x39   : > { %p863_p1 = scmp.ne.s32.totalorder %s1073_s30, %s862_s21  ;;  %s867_s11 = sshll.u32 %s950_s10, 4  ;;  %s868_s11 = int_to_ptr.vmem [resolvable:$false] %s867_s11 }
  0x3a   : > { %s869_s12 = scalar_lea.vmem %s868_s11, 256  ;;  %p870_p8 = scmp.lt.s32.totalorder %s1073_s30, %s868_s11 }
  0x3b   : > { %p865_p4 = pnand %p863_p1, %p849_p11  ;;  %p871_p12 = scmp.lt.s32.totalorder %s869_s12, %s862_s21 }
  0x3d   : > { %p866_p5 = pneg %p865_p4  ;;  %p872_p0 = por %p871_p12, %p870_p8 }
  0x3f   : > { %p873_p2 = pnand %p872_p0, %p866_p5 }
  0x41   : > { %876 = shalt.err (!%p873_p2)
}
  0x42   : > { %767 = dma.hbm_to_vmem [thread:$0]  (!%p1075_p6), %s1071_s15, 128, %s1073_s30, %s219_s24  }
  0x43   : > { %p1212_p13 = scmp.ne.s32.totalorder %s1209_s27, 0 }
  0x44   : > { %s247_s13 = sand.u32 (!%p1212_p13), 1, %s937_s22   ;;  %p1213_p11 = scmp.ne.s32.totalorder (!%p1212_p13), %s1208_s26, 0 }
  0x45   : > { %245 = sbr.rel (%p1212_p13) target bundleno = 943 (0x3af), region = 44  ;;  %s1107_s14 = sshll.u32 (!%p1212_p13), %s247_s13, 3 }
  0x46   : > { %s248_s29 = scalar_lea.sflag (!%p1212_p13), [#allocation9], %s247_s13  ;;  %s251_s9 = scalar_lea.vmem (!%p1212_p13), [#allocation8], %s1107_s14 }
  0x4c   : > { %920 = dma.done.wait (%p1213_p11), %s248_s29, 128  }
  0x4d   : > { %922 = vsyncadd (%p1213_p11), %s248_s29, 4294967168  ;;  %p1214_p3 = scmp.eq.s32.totalorder %s1012_s25, 0 }
  0x4f   : > { %924 = dma.done.wait (%p1214_p3), [#allocation12], 512   ;;  %p1215_p6 = pmov %p1214_p3 }
  0x50   : > { %p283_p7 = scmp.lt.s32.totalorder %s1012_s25, 2  ;;  %p1216_p9 = scmp.ne.s32.totalorder %s1012_s25, 0 }
  0x51   : > { %926 = vsyncadd (%p1215_p6), [#allocation12], 4294966784  ;;  %vm291_vm0 = vcmask (!%p1216_p9), 122880   ;;  %v951_v0 = vmov (!%p1216_p9), 0.0  }
  0x52   : > { %s284_s27 = scalar_select %p283_p7, %s1012_s25, 2 }
  0x53   : > { %290 = sbr.rel (%p1216_p9) target bundleno = 90 (0x5a), region = 56  ;;  %292 = vst.msk [vmem:[#allocation2] sm:$0x1] (!%p1216_p9), %vm291_vm0, %v951_v0  ;;  %293 = vst.msk [vmem:[#allocation3] sm:$0x1] (!%p1216_p9), %vm291_vm0, %v951_v0 }
  0x54   : > { %s692_s15 = sshll.u32 %s284_s27, 3  ;;  %294 = vst.msk [vmem:[#allocation4] sm:$0x1] (!%p1216_p9), %vm291_vm0, %v951_v0  ;;  %295 = vst.msk [vmem:[#allocation5] sm:$0x1] (!%p1216_p9), %vm291_vm0, %v951_v0 }
  0x55   : > { %s1123_s24 = scalar_lea.vmem %s1199_s1, %s692_s15  ;;  %296 = vst.msk [vmem:[#allocation6] sm:$0x1] (!%p1216_p9), %vm291_vm0, %v951_v0  ;;  %297 = vst.msk [vmem:[#allocation7] sm:$0x1] (!%p1216_p9), %vm291_vm0, %v951_v0 }
  0x5a PF: > { %v300_v1 = vld [vmem:[%s1200_s2] sm:$0xff]  ;;  %v301_v2 = vld [vmem:[%s1200_s2 + $0x8] sm:$0xff]  ;;  %v302_v3 = vld [vmem:[%s1200_s2 + $0x10] sm:$0xff]  ;;  %v952_v4 = vmov 0.0|0.0   ;;  %vm953_vm1 = vmmov 0   ;;  %v954_v7 = vmov 0.0   ;;  %v475_v36 = vlaneseq }
  0x5b   : > { %736 = vmatprep.subr.bf16.mxu0 %v952_v4  ;;  %v737_v5 = vpack.c.bf16 %v301_v2, %v300_v1  ;;  %v303_v6 = vld [vmem:[%s1200_s2 + $0x18] sm:$0xff]  ;;  %722 = vmatprep.mubr.msk.f32.mxu0 %vm953_vm1, %v954_v7  ;;  %v298_v12 = vld [vmem:[%s251_s9] sm:$0xff]  ;;  %vm311_vm2 = vcmask 261120   ;;  %v694_v16 = vld [vmem:[%s1201_s3] ss:$0 sm:$0xff]  ;;  %vm488_vm3 = vcmask 130048  }
  0x5c   : > { %v386_v8 = vld [vmem:[#allocation11] sm:$0xff]  ;;  %742 = vmatprep.subr.bf16.mxu1 %v952_v4  ;;  %v387_v9 = vld [vmem:[#allocation11 + $0x8] sm:$0xff]  ;;  %733 = vmatprep.mubr.msk.f32.mxu1 %vm953_vm1, %v954_v7  ;;  %v740_v10 = vpack.c.bf16 %v303_v6, %v302_v3  ;;  %v388_v13 = vld [vmem:[#allocation11 + $0x10] sm:$0xff]  ;;  %s698_s14 = sshll.u32 %s1012_s25, 3  ;;  %v476_v39 = vshrl.u32 %v475_v36, 7  ;;  %vm511_vm5 = vcmask 261248  }
  0x5d   : > { %738 = vmatpush3.bf16.msra.mxu0 %v737_v5  ;;  %v743_v11 = vpack.c.bf16 %v387_v9, %v386_v8  ;;  %v389_v14 = vld [vmem:[#allocation11 + $0x18] sm:$0xff]  ;;  %v696_v21 = vld [vmem:[%s1203_s5] ss:$0 sm:$0xff]  ;;  %v478_v42 = vstv %s698_s14  ;;  %v499_v51 = vld [vmem:[#allocation3] sm:$0x1]  ;;  %s955_s9 = smov 112  }
  0x5e   : > { %739 = vmatprep.subr.bf16.mxu0 %v952_v4  ;;  %v746_v15 = vpack.c.bf16 %v389_v14, %v388_v13  ;;  %v299_v23 = vld [vmem:[%s1123_s24] sm:$0xff]  ;;  %v479_v43 = vadd.s32 %v478_v42, %v476_v39  ;;  %v956_v57 = vmov 1966171168   ;;  %vm497_vm6 = vcmask 122880   ;;  %p699_p10 = scmp.ne.s32.totalorder %s1012_s25, 2 }
  0x5f   : > { %744 = vmatpush3.bf16.msra.mxu1 %v743_v11  ;;  %v500_v26 = vmul.f32 %v299_v23, %v299_v23  ;;  %v489_v27 = vsel %vm488_vm3, %v299_v23, 0.0  ;;  %v487_v50 = vld [vmem:[#allocation2] sm:$0x1]  ;;  %v521_v58 = vunpack.c.l.s4 %v956_v57  ;;  %vm602_vm7 = vcmask (!%p699_p10), 0  }
  0x60   : > { %745 = vmatprep.subr.bf16.mxu1 %v952_v4  ;;  %v490_v29 = vrot.slane %v489_v27, 4  ;;  %vm480_vm4 = vcmp.lt.s32.totalorder %v479_v43, 20 }
  0x61   : > { %741 = vmatpush3.bf16.msra.mxu0 %v740_v10  ;;  %v501_v28 = vsel %vm488_vm3, %v500_v26, 0.0  ;;  %v522_v61 = vunpack.c.0.s8 %v521_v58 }
  0x62   : > { %v502_v30 = vrot.slane %v501_v28, 4  ;;  %v491_v31 = vadd.f32 %v490_v29, %v489_v27 }
  0x63   : > { %747 = vmatpush3.bf16.msra.mxu1 %v746_v15  ;;  %v525_v0 = vsub.s32 %v522_v61, %v476_v39 }
  0x64   : > { %723 = vmatmul.mubr.msk.f32.vlgmr.msra.gmra.mrb[0].mxu0 %vm311_vm2, %v298_v12  ;;  %v503_v32 = vadd.f32 %v502_v30, %v501_v28  ;;  %v492_v37 = vrot.slane %v491_v31, 2  ;;  %v550_v30 = vld [vmem:[#allocation6] sm:$0x1] }
  0x66   : > { %v504_v38 = vrot.slane %v503_v32, 2  ;;  %v493_v40 = vadd.f32 %v492_v37, %v491_v31  ;;  %v510_v31 = vld [vmem:[#allocation4] sm:$0x1] }
  0x68   : > { %v505_v41 = vadd.f32 %v504_v38, %v503_v32  ;;  %v494_v44 = vrot.slane %v493_v40, 1 }
  0x6a   : > { %v506_v45 = vrot.slane %v505_v41, 1  ;;  %v495_v47 = vadd.f32 %v494_v44, %v493_v40 }
  0x6c   : > { %v507_v48 = vadd.f32 %v506_v45, %v505_v41  ;;  %v496_v54 = vadd.f32 %v495_v47, %v487_v50 }
  0x6e   : > { %v508_v55 = vadd.f32 %v507_v48, %v499_v51  ;;  %498 = vst.msk [vmem:[#allocation2] sm:$0x1] %vm497_vm6, %v496_v54 }
  0x70   : > { %509 = vst.msk [vmem:[#allocation3] sm:$0x1] %vm497_vm6, %v508_v55 }
  0x75   : > { %v575_v38 = vld [vmem:[#allocation2] sm:$0x1] (!%p699_p10) }
  0x76   : > { %v576_v41 = vmul.f32 (!%p699_p10), 0.05, %v575_v38 }
  0x77   : > { %v577_v39 = vld [vmem:[#allocation3] sm:$0x1] (!%p699_p10) }
  0x78   : > { %v578_v42 = vmul.f32 (!%p699_p10), 0.05, %v577_v39  ;;  %v586_v48 = vmul.f32 (!%p699_p10), 2.0, %v576_v41 }
 0x137   : > { %v381_v17 = vpop.f32.mrb[0].mxu0 }
 0x138   : > { %v382_v18 = vadd.f32 %v694_v16, %v381_v17  ;;  %v724_v19 = vpop.f32.mrb[1].mxu0 }
 0x13a   : > { %v385_v20 = vmax.f32 %v382_v18, 0.0 }
 0x13c   : > { %734 = vmatmul.mubr.msk.f32.vlgmr.msra.gmra.mrb[0].mxu1 %vm311_vm2, %v385_v20 }
 0x20f   : > { %v466_v22 = vpop.f32.mrb[0].mxu1 }
 0x210   : > { %v467_v24 = vadd.f32 %v696_v21, %v466_v22  ;;  %v735_v25 = vpop.f32.mrb[1].mxu1 }
 0x212   : > { %815 = vtanh.f32 %v467_v24 }
 0x21c   : > { %v816_v33 = vpop.eup %815 }
 0x21d   : > { %v471_v34 = vsub.f32 0.0, %v816_v33 }
 0x21f   : > { %v472_v35 = vmul.f32 1.442695, %v471_v34 }
 0x221   : > { %817 = vpow2.f32 %v472_v35 }
 0x22b   : > { %v818_v46 = vpop.eup %817 }
 0x22c   : > { %v474_v49 = vmul.f32 0.5, %v818_v46 }
 0x22e   : > { %v481_v52 = vsel %vm480_vm4, %v474_v49, 0.0 }
 0x22f   : > { %483 = vrot.lane.b32.xlu0 %v481_v52, %s955_s9  ;;  %v512_v53 = vsel %vm511_vm5, %v481_v52, 0.0 }
 0x230   : > { %v513_v56 = vrot.slane %v512_v53, 4 }
 0x232   : > { %v514_v59 = vadd.f32 %v513_v56, %v512_v53 }
 0x234   : > { %v515_v60 = vrot.slane %v514_v59, 2 }
 0x236   : > { %v516_v62 = vadd.f32 %v515_v60, %v514_v59 }
 0x238   : > { %v517_v63 = vrot.slane %v516_v62, 1 }
 0x23a   : > { %v518_v1 = vadd.f32 %v517_v63, %v516_v62 }
 0x23c   : > { %v526_v2 = vrot.slane %v518_v1, %v525_v0 }
 0x23e   : > { %v533_v3 = vrot.slane %v526_v2, %v525_v0 }
 0x240   : > { %534 = vrot.lane.b32.xlu0 %v533_v3, %s955_s9 }
 0x2a1   : > { %v484_v4 = vpop.permute.xlu0 %483 }
 0x2a2   : > { %v486_v5 = vmul.f32 %v484_v4, %v467_v24  ;;  %v540_v6 = vmul.f32 %v500_v26, %v484_v4  ;;  %v539_v26 = vld [vmem:[#allocation5] sm:$0x1] }
 0x2a4   : > { %v541_v7 = vsel %vm488_vm3, %v540_v6, 0.0  ;;  %v551_v8 = vmul.f32 %v486_v5, %v299_v23  ;;  %v562_v9 = vsel %vm488_vm3, %v486_v5, 0.0  ;;  %v561_v23 = vld [vmem:[#allocation7] sm:$0x1] }
 0x2a5   : > { %v542_v10 = vrot.slane %v541_v7, 4  ;;  %v563_v11 = vrot.slane %v562_v9, 4 }
 0x2a6   : > { %v552_v12 = vsel %vm488_vm3, %v551_v8, 0.0 }
 0x2a7   : > { %v543_v13 = vadd.f32 %v542_v10, %v541_v7  ;;  %v553_v14 = vrot.slane %v552_v12, 4  ;;  %v564_v15 = vadd.f32 %v563_v11, %v562_v9 }
 0x2a9   : > { %v544_v16 = vrot.slane %v543_v13, 2  ;;  %v554_v17 = vadd.f32 %v553_v14, %v552_v12  ;;  %v565_v18 = vrot.slane %v564_v15, 2 }
 0x2ab   : > { %v545_v19 = vadd.f32 %v544_v16, %v543_v13  ;;  %v555_v20 = vrot.slane %v554_v17, 2  ;;  %v566_v21 = vadd.f32 %v565_v18, %v564_v15 }
 0x2ad   : > { %v546_v22 = vrot.slane %v545_v19, 1  ;;  %v556_v24 = vadd.f32 %v555_v20, %v554_v17  ;;  %v567_v25 = vrot.slane %v566_v21, 1 }
 0x2af   : > { %v547_v27 = vadd.f32 %v546_v22, %v545_v19  ;;  %v557_v28 = vrot.slane %v556_v24, 1  ;;  %v568_v29 = vadd.f32 %v567_v25, %v566_v21  ;;  %574 = sbr.rel (%p699_p10) target bundleno = 918 (0x396), region = 60 }
 0x2b1   : > { %v548_v32 = vadd.f32 %v547_v27, %v539_v26  ;;  %v558_v33 = vadd.f32 %v557_v28, %v556_v24  ;;  %v569_v34 = vadd.f32 %v568_v29, %v561_v23 }
 0x2b2   : > { %v535_v35 = vpop.permute.xlu0 %534 }
 0x2b3   : > { %v559_v36 = vadd.f32 %v558_v33, %v550_v30  ;;  %549 = vst.msk [vmem:[#allocation5] sm:$0x1] %vm497_vm6, %v548_v32  ;;  %570 = vst.msk [vmem:[#allocation7] sm:$0x1] %vm497_vm6, %v569_v34  ;;  %v537_v37 = vadd.f32 %v535_v35, %v510_v31 }
 0x2b5   : > { %560 = vst.msk [vmem:[#allocation6] sm:$0x1] %vm497_vm6, %v559_v36  ;;  %538 = vst.msk [vmem:[#allocation4] sm:$0x1] %vm497_vm6, %v537_v37 }
 0x2ba   : > { %v581_v43 = vld [vmem:[#allocation5] sm:$0x1]  ;;  %v587_v45 = vld [vmem:[#allocation7] sm:$0x1] }
 0x2bb   : > { %v588_v50 = vmul.f32 %v587_v45, %v586_v48 }
 0x2bc   : > { %v579_v40 = vld [vmem:[#allocation4] sm:$0x1]  ;;  %v583_v44 = vld [vmem:[#allocation6] sm:$0x1] }
 0x2bd   : > { %v580_v46 = vmul.f32 %v579_v40, %v578_v42  ;;  %v584_v47 = vmul.f32 2.0, %v583_v44 }
 0x2bf   : > { %v582_v49 = vsub.f32 %v580_v46, %v581_v43 }
 0x2c1   : > { %v585_v51 = vadd.f32 %v584_v47, %v582_v49 }
 0x2c3   : > { %v589_v52 = vsub.f32 %v585_v51, %v588_v50 }
 0x2c5   : > { %v590_v53 = vsel %vm497_vm6, %v589_v52, 0.0 }
 0x2c6   : > { %591 = vadd.xlane.f32.xlu0 %v590_v53 }
 0x353   : > { %v592_v54 = vpop.xlane.xlu0 %591 }
 0x354   : > { %v593_v55 = vrot.slane %v592_v54, 4 }
 0x356   : > { %v594_v56 = vadd.f32 %v593_v55, %v592_v54 }
 0x358   : > { %v595_v57 = vrot.slane %v594_v56, 2 }
 0x35a   : > { %v596_v58 = vadd.f32 %v595_v57, %v594_v56 }
 0x35c   : > { %v597_v59 = vrot.slane %v596_v58, 1 }
 0x35e   : > { %v598_v60 = vadd.f32 %v597_v59, %v596_v58 }
 0x360   : > { %748 = vpush %v598_v60 }
 0x391   : > { %s749_s27 = spop %748 }
 0x392   : > { %v600_v61 = vstv %s749_s27 }
 0x393   : > { %v601_v62 = vmul.f32 0.05, %v600_v61 }
 0x395   : > { %603 = vst.msk [vmem:[#allocation13] sm:$0x1] %vm602_vm7, %v601_v62 }
 0x396 PF: > { %p771_p1 = scmp.eq.s32.totalorder %s1012_s25, 2  ;;  %s957_s15 = smov [#allocation13]  }
 0x397   : > { %s611_s30 = sshll.u32 %s957_s15, 4  ;;  %s612_s30 = int_to_ptr.vmem [resolvable:$true] %s611_s30 }
 0x398   : > { %s877_s8 = scalar_lea.vmem %s612_s30, 16  ;;  %s883_s24 = scalar_lea.vmem %s612_s30, 32 }
 0x399   : > { %p878_p4 = scmp.ne.s32.totalorder %s612_s30, %s877_s8  ;;  %p884_p12 = scmp.lt.s32.totalorder %s612_s30, %s612_s30 }
 0x39a   : > { %p885_p0 = scmp.lt.s32.totalorder %s883_s24, %s877_s8 }
 0x39b   : > { %p879_p5 = pnand %p878_p4, %p771_p1 }
 0x39c   : > { %p886_p2 = por %p885_p0, %p884_p12 }
 0x39d   : > { %p880_p8 = pneg %p879_p5 }
 0x39f   : > { %p887_p13 = pnand %p886_p2, %p880_p8 }
 0x3a1   : > { %890 = shalt.err (!%p887_p13)
}
 0x3a2   : > { %s891_s17 = scalar_lea.hbm %s1204_s6, 16 }
 0x3a3   : > { %p892_p11 = scmp.ne.s32.totalorder %s1204_s6, %s891_s17  ;;  %p897_p7 = scmp.lt.u32.totalorder %s891_s17, %s1204_s6 }
 0x3a5   : > { %p893_p3 = pnand %p892_p11, %p771_p1 }
 0x3a7   : > { %p894_p6 = pneg %p893_p3 }
 0x3a9   : > { %p899_p9 = pnand %p897_p7, %p894_p6 }
 0x3ab   : > { %902 = shalt.err (!%p899_p9)
}
 0x3ac   : > { %757 = dma.vmem_to_hbm [thread:$0]  (%p771_p1), %s612_s30, 16, %s1204_s6, [#allocation10]  }
 0x3ad   : > { %928 = dma.done.wait (%p771_p1), [#allocation10], 16  }
 0x3ae   : > { %930 = vsyncadd (%p771_p1), [#allocation10], 4294967280 }
 0x3af PF: > { %p18_p10 = scmp.ge.s32.totalorder %s1038_s7, 5   ;;  %s1217_s21 = smov %s937_s22 }
 0x3b0   : > { %s1218_s22 = smov %s941_s23  ;;  %s1219_s23 = smov %s1064_s28 }
 0x3b1   : > { %s1220_s24 = smov %s1038_s7  ;;  %20 = sbr.rel (!%p18_p10) target bundleno = 5 (0x5), region = 96 }
 0x3b8   :  { %624 = vsyncpa [#allocation9], 1 }
 0x3b9   :  { %626 = vsyncpa [#allocation9 + $0x1], 1 }
 0x3ba   :  { %627 = vsyncpa [#allocation12], 1 }
 0x3bb   :  { %628 = vsyncpa [#allocation10], 1 }
 0x3bc   :  { %630 = vsyncpa [#allocation10 + $0x1], 1 }

</bundles_post_ra>
